<compile_context>
chip_gen: v5e
topology: v5e:2x2
jax: 0.10.0
libtpu: 0.0.40
codegen_flags: <defaults>
</compile_context>

<pallas_src>
import functools

import jax
import jax.numpy as jnp
from jax.experimental import pallas as pl
from jax.experimental.pallas import tpu as pltpu

EMB_DIM = 16  # MPKMeans(emb_dim=16) / output_fm.reshape((1, 16, -1)) in the module


# ----------------------------------------------------------------------------
# Pallas kernel: fused cosine-similarity map + per-tile MSE partial sums
# ----------------------------------------------------------------------------
def _sim_mse_kernel(center_ref, feat_ref, hm_ref, sim_ref, partial_ref,
                    *, num_channels, tile_rows, eps):
    # feat_ref: (C, tile_rows, 128) in native dtype; center_ref: (C,) f32 SMEM
    # hm_ref / sim_ref: (tile_rows, 128); partial_ref: (1, 8, 128) f32

    zeros = jnp.zeros((tile_rows, 128), jnp.float32)

    def body(c_idx, carry):
        acc, fsq = carry
        f = feat_ref[c_idx].astype(jnp.float32)          # (tile_rows, 128)
        acc = acc + f * center_ref[c_idx]                # scalar broadcast (SMEM)
        fsq = fsq + f * f
        return acc, fsq

    # Channel contraction on the major axis: pure VPU multiply-adds, no XLU.
    acc, fsq = jax.lax.fori_loop(0, num_channels, body, (zeros, zeros),
                                 unroll=True)

    # Center is pre-normalized in the wrapper; only the per-pixel norm remains.
    sim = acc * jax.lax.rsqrt(fsq + jnp.float32(eps))    # (tile_rows, 128)
    sim_ref[...] = sim.astype(sim_ref.dtype)

    diff = sim - hm_ref[...].astype(jnp.float32)
    d2 = diff * diff
    # Fold sublane rows 8-at-a-time (free reshape + VPU adds) -> (8, 128) partial.
    part = jnp.sum(d2.reshape(tile_rows // 8, 8, 128), axis=0)
    partial_ref[0] = part


def tomo_cluster_postprocess_mse(cluster_used, proj, hm, *, tile_rows=64):
    """cluster_used: (C,), proj: (1, C, H, W) NCHW, hm: (1, H, W).

    Returns (similarities (H, W) float32, mse_loss scalar float32).
    # TODO(synk): no custom VJP defined; eval/inference path only.
    """
    _, C, H, W = proj.shape
    assert C == EMB_DIM
    N = H * W

    # Spatial axis laid out sublane-dense: (rows, 128) with rows = ceil(N/128).
    rows = (N + 127) // 128
    # Keep padding modest for tiny inputs, big tiles for real tomograms.
    tile_rows_eff = min(tile_rows, ((rows + 7) // 8) * 8)
    assert tile_rows_eff % 8 == 0
    padded_rows = ((rows + tile_rows_eff - 1) // tile_rows_eff) * tile_rows_eff
    padded_n = padded_rows * 128

    # Keep feat/hm in their native dtype through the DMA; upcast in-kernel.
    feat = proj.reshape(C, N)
    hm_flat = hm.reshape(N)
    if padded_n != N:
        # Zero padding: sim==0 and hm==0 on padded lanes -> zero SSE contribution.
        feat = jnp.pad(feat, ((0, 0), (0, padded_n - N)))
        hm_flat = jnp.pad(hm_flat, (0, padded_n - N))
    feat3 = feat.reshape(C, padded_rows, 128)
    hm2 = hm_flat.reshape(padded_rows, 128)

    # Pre-normalize the cluster center on the host side (16 floats).
    c = cluster_used.astype(jnp.float32)
    c_norm = c * jax.lax.rsqrt(jnp.sum(c * c) + jnp.float32(1e-12))

    num_tiles = padded_rows // tile_rows_eff
    kernel = functools.partial(_sim_mse_kernel, num_channels=C,
                               tile_rows=tile_rows_eff, eps=1e-12)

    sim2, partials = pl.pallas_call(
        kernel,
        out_shape=(
            jax.ShapeDtypeStruct((padded_rows, 128), jnp.float32),   # sim map
            jax.ShapeDtypeStruct((num_tiles, 8, 128), jnp.float32),  # SSE partials
        ),
        grid_spec=pltpu.PrefetchScalarGridSpec(
            num_scalar_prefetch=0,
            grid=(num_tiles,),
            in_specs=[
                pl.BlockSpec(memory_space=pltpu.MemorySpace.SMEM),   # center (C,)
                pl.BlockSpec((C, tile_rows_eff, 128), lambda j: (0, j, 0)),
                pl.BlockSpec((tile_rows_eff, 128), lambda j: (j, 0)),
            ],
            out_specs=[
                pl.BlockSpec((tile_rows_eff, 128), lambda j: (j, 0)),
                pl.BlockSpec((1, 8, 128), lambda j: (j, 0, 0)),
            ],
        ),
        compiler_params=pltpu.CompilerParams(
            dimension_semantics=("parallel",)),
    )(c_norm, feat3, hm2)

    loss = jnp.sum(partials) / jnp.float32(N)
    similarities = sim2.reshape(padded_n)[:N].reshape(H, W)
    return similarities, loss


# ----------------------------------------------------------------------------
# TomoKMLoss wrapper (eval branch of the PyTorch forward)
# ----------------------------------------------------------------------------
class Opt:
    def __init__(self):
        self.mse_loss = True   # crit = MSELoss  (# TODO(synk): FocalLoss branch not implemented)
        self.contrastive = False
        self.num_stacks = 1
        self.n_clusters = 4
        self.temp = 0.07
        self.cr_weight = 0.1


class TomoKMLoss:
    def __init__(self, opt):
        self.opt = opt

    def __call__(self, outputs, batch, epoch, phase,
                 outputs_cr=None, cluster_center=None, cluster_ind=None):
        opt = self.opt
        output = None
        for s in range(opt.num_stacks):
            output = outputs[s]

        if opt.contrastive and phase == 'train':
            # TODO(synk): contrastive-train branch (MPKMeans / vMF / partial-sup
            # losses, dynamic boolean-mask gathers) has no reference code and no
            # clean static-shape Pallas equivalent; not implemented.
            raise NotImplementedError("contrastive train branch not implemented")

        gt_labels = batch['hm']                       # (1, H, W)
        output_fm = output['proj']                    # (1, 16, H, W)  NCHW
        cluster_used = cluster_center[cluster_ind]    # (16,)  (gradients stopped)
        cluster_used = jax.lax.stop_gradient(cluster_used)

        similarities, loss = tomo_cluster_postprocess_mse(cluster_used, output_fm,
                                                          gt_labels)
        vmf_loss = loss * 0.0
        sup_loss = loss
        loss_stats = {'loss': loss, 'vmf_loss': vmf_loss, 'sup_loss': sup_loss}
        return loss, loss_stats, cluster_center, cluster_ind


# ----------------------------------------------------------------------------
# Pure-JAX reference (silent correctness check)
# ----------------------------------------------------------------------------
def _reference(cluster_used, proj, hm):
    C = proj.shape[1]
    feat = proj.reshape(C, -1).astype(jnp.float32)                    # (C, N)
    c = cluster_used.astype(jnp.float32)
    fn = feat * jax.lax.rsqrt(jnp.sum(feat * feat, axis=0, keepdims=True) + 1e-12)
    cn = c * jax.lax.rsqrt(jnp.sum(c * c) + 1e-12)
    sim = jnp.sum(fn * cn[:, None], axis=0)                           # (N,)
    loss = jnp.mean((sim - hm.reshape(-1).astype(jnp.float32)) ** 2)
    return sim.reshape(hm.shape[1:]), loss


if __name__ == "__main__":
    opt = Opt()
    key = jax.random.PRNGKey(0)
    k1, k2, k3, k4, k5 = jax.random.split(key, 5)

    # --- case 1: small square map (N multiple of 128 after padding) ---
    B, C, H, W = 1, EMB_DIM, 16, 16
    proj = jax.random.normal(k1, (B, C, H, W), dtype=jnp.float32)
    hm = jax.nn.sigmoid(jax.random.normal(k2, (B, H, W), dtype=jnp.float32))
    cluster_center = jax.random.normal(k3, (opt.n_clusters, EMB_DIM),
                                       dtype=jnp.float32)
    cluster_ind = 1

    outputs = [{'proj': proj}]
    batch = {'hm': hm}

    loss_fn = TomoKMLoss(opt)
    loss, loss_stats, centers_out, ind_out = loss_fn(
        outputs, batch, epoch=0, phase='val',
        cluster_center=cluster_center, cluster_ind=cluster_ind)
    loss = jax.block_until_ready(loss)

    sim_k, loss_k = tomo_cluster_postprocess_mse(cluster_center[cluster_ind],
                                                 proj, hm)
    sim_r, loss_r = _reference(cluster_center[cluster_ind], proj, hm)
    assert jnp.allclose(sim_k, sim_r, atol=1e-5, rtol=1e-5)
    assert jnp.allclose(loss_k, loss_r, atol=1e-6, rtol=1e-5)
    assert jnp.allclose(loss, loss_r, atol=1e-6, rtol=1e-5)

    # --- case 2: ragged spatial size (exercises zero-padding + masking-by-zero) ---
    H2, W2 = 11, 13
    proj2 = jax.random.normal(k4, (1, EMB_DIM, H2, W2), dtype=jnp.float32)
    hm2 = jax.nn.sigmoid(jax.random.normal(k5, (1, H2, W2), dtype=jnp.float32))
    sim_k2, loss_k2 = tomo_cluster_postprocess_mse(cluster_center[cluster_ind],
                                                   proj2, hm2)
    sim_r2, loss_r2 = _reference(cluster_center[cluster_ind], proj2, hm2)
    jax.block_until_ready(loss_k2)
    assert jnp.allclose(sim_k2, sim_r2, atol=1e-5, rtol=1e-5)
    assert jnp.allclose(loss_k2, loss_r2, atol=1e-6, rtol=1e-5)

    print("KERNEL_OK")
</pallas_src>

<mosaic_0001>
module attributes {stable_mosaic.version = 11 : i64} {
  func.func @_sim_mse_kernel(%arg0: i32, %arg1: memref<16xf32, #tpu.memory_space<smem>>, %arg2: memref<16x8x128xf32, #tpu.memory_space<vmem>>, %arg3: memref<8x128xf32, #tpu.memory_space<vmem>>, %arg4: memref<8x128xf32, #tpu.memory_space<vmem>>, %arg5: memref<1x8x128xf32, #tpu.memory_space<vmem>>) attributes {dimension_semantics = [#tpu.dimension_semantics<parallel>], iteration_bounds = array<i64: 1>, scalar_prefetch = 0 : i64, scratch_operands = 0 : i64, tpu.core_type = #tpu.core_type<tc>, window_params = [{transform_indices = @transform_0, window_bounds = array<i64: 16>}, {transform_indices = @transform_1, window_bounds = array<i64: 16, 8, 128>}, {transform_indices = @transform_2, window_bounds = array<i64: 8, 128>}, {transform_indices = @transform_3, window_bounds = array<i64: 8, 128>}, {transform_indices = @transform_4, window_bounds = array<i64: 1, 8, 128>}]} {
    %cst = arith.constant 0.000000e+00 : f32
    %0 = vector.broadcast %cst : f32 to vector<8x128xf32>
    %c0_i32 = arith.constant 0 : i32
    %1 = arith.index_cast %c0_i32 : i32 to index
    %c0 = arith.constant 0 : index
    %c0_0 = arith.constant 0 : index
    %2 = vector.load %arg2[%1, %c0, %c0_0] : memref<16x8x128xf32, #tpu.memory_space<vmem>>, vector<1x8x128xf32>
    %3 = vector.shape_cast %2 : vector<1x8x128xf32> to vector<8x128xf32>
    %4 = arith.index_cast %c0_i32 : i32 to index
    %5 = memref.load %arg1[%4] : memref<16xf32, #tpu.memory_space<smem>>
    %6 = vector.broadcast %5 : f32 to vector<8x128xf32>
    %7 = arith.mulf %3, %6 : vector<8x128xf32>
    %8 = arith.addf %0, %7 : vector<8x128xf32>
    %9 = arith.mulf %3, %3 : vector<8x128xf32>
    %10 = arith.addf %0, %9 : vector<8x128xf32>
    %c1_i32 = arith.constant 1 : i32
    %11 = arith.index_cast %c1_i32 : i32 to index
    %c0_1 = arith.constant 0 : index
    %c0_2 = arith.constant 0 : index
    %12 = vector.load %arg2[%11, %c0_1, %c0_2] : memref<16x8x128xf32, #tpu.memory_space<vmem>>, vector<1x8x128xf32>
    %13 = vector.shape_cast %12 : vector<1x8x128xf32> to vector<8x128xf32>
    %14 = arith.index_cast %c1_i32 : i32 to index
    %15 = memref.load %arg1[%14] : memref<16xf32, #tpu.memory_space<smem>>
    %16 = vector.broadcast %15 : f32 to vector<8x128xf32>
    %17 = arith.mulf %13, %16 : vector<8x128xf32>
    %18 = arith.addf %8, %17 : vector<8x128xf32>
    %19 = arith.mulf %13, %13 : vector<8x128xf32>
    %20 = arith.addf %10, %19 : vector<8x128xf32>
    %c2_i32 = arith.constant 2 : i32
    %21 = arith.index_cast %c2_i32 : i32 to index
    %c0_3 = arith.constant 0 : index
    %c0_4 = arith.constant 0 : index
    %22 = vector.load %arg2[%21, %c0_3, %c0_4] : memref<16x8x128xf32, #tpu.memory_space<vmem>>, vector<1x8x128xf32>
    %23 = vector.shape_cast %22 : vector<1x8x128xf32> to vector<8x128xf32>
    %24 = arith.index_cast %c2_i32 : i32 to index
    %25 = memref.load %arg1[%24] : memref<16xf32, #tpu.memory_space<smem>>
    %26 = vector.broadcast %25 : f32 to vector<8x128xf32>
    %27 = arith.mulf %23, %26 : vector<8x128xf32>
    %28 = arith.addf %18, %27 : vector<8x128xf32>
    %29 = arith.mulf %23, %23 : vector<8x128xf32>
    %30 = arith.addf %20, %29 : vector<8x128xf32>
    %c3_i32 = arith.constant 3 : i32
    %31 = arith.index_cast %c3_i32 : i32 to index
    %c0_5 = arith.constant 0 : index
    %c0_6 = arith.constant 0 : index
    %32 = vector.load %arg2[%31, %c0_5, %c0_6] : memref<16x8x128xf32, #tpu.memory_space<vmem>>, vector<1x8x128xf32>
    %33 = vector.shape_cast %32 : vector<1x8x128xf32> to vector<8x128xf32>
    %34 = arith.index_cast %c3_i32 : i32 to index
    %35 = memref.load %arg1[%34] : memref<16xf32, #tpu.memory_space<smem>>
    %36 = vector.broadcast %35 : f32 to vector<8x128xf32>
    %37 = arith.mulf %33, %36 : vector<8x128xf32>
    %38 = arith.addf %28, %37 : vector<8x128xf32>
    %39 = arith.mulf %33, %33 : vector<8x128xf32>
    %40 = arith.addf %30, %39 : vector<8x128xf32>
    %c4_i32 = arith.constant 4 : i32
    %41 = arith.index_cast %c4_i32 : i32 to index
    %c0_7 = arith.constant 0 : index
    %c0_8 = arith.constant 0 : index
    %42 = vector.load %arg2[%41, %c0_7, %c0_8] : memref<16x8x128xf32, #tpu.memory_space<vmem>>, vector<1x8x128xf32>
    %43 = vector.shape_cast %42 : vector<1x8x128xf32> to vector<8x128xf32>
    %44 = arith.index_cast %c4_i32 : i32 to index
    %45 = memref.load %arg1[%44] : memref<16xf32, #tpu.memory_space<smem>>
    %46 = vector.broadcast %45 : f32 to vector<8x128xf32>
    %47 = arith.mulf %43, %46 : vector<8x128xf32>
    %48 = arith.addf %38, %47 : vector<8x128xf32>
    %49 = arith.mulf %43, %43 : vector<8x128xf32>
    %50 = arith.addf %40, %49 : vector<8x128xf32>
    %c5_i32 = arith.constant 5 : i32
    %51 = arith.index_cast %c5_i32 : i32 to index
    %c0_9 = arith.constant 0 : index
    %c0_10 = arith.constant 0 : index
    %52 = vector.load %arg2[%51, %c0_9, %c0_10] : memref<16x8x128xf32, #tpu.memory_space<vmem>>, vector<1x8x128xf32>
    %53 = vector.shape_cast %52 : vector<1x8x128xf32> to vector<8x128xf32>
    %54 = arith.index_cast %c5_i32 : i32 to index
    %55 = memref.load %arg1[%54] : memref<16xf32, #tpu.memory_space<smem>>
    %56 = vector.broadcast %55 : f32 to vector<8x128xf32>
    %57 = arith.mulf %53, %56 : vector<8x128xf32>
    %58 = arith.addf %48, %57 : vector<8x128xf32>
    %59 = arith.mulf %53, %53 : vector<8x128xf32>
    %60 = arith.addf %50, %59 : vector<8x128xf32>
    %c6_i32 = arith.constant 6 : i32
    %61 = arith.index_cast %c6_i32 : i32 to index
    %c0_11 = arith.constant 0 : index
    %c0_12 = arith.constant 0 : index
    %62 = vector.load %arg2[%61, %c0_11, %c0_12] : memref<16x8x128xf32, #tpu.memory_space<vmem>>, vector<1x8x128xf32>
    %63 = vector.shape_cast %62 : vector<1x8x128xf32> to vector<8x128xf32>
    %64 = arith.index_cast %c6_i32 : i32 to index
    %65 = memref.load %arg1[%64] : memref<16xf32, #tpu.memory_space<smem>>
    %66 = vector.broadcast %65 : f32 to vector<8x128xf32>
    %67 = arith.mulf %63, %66 : vector<8x128xf32>
    %68 = arith.addf %58, %67 : vector<8x128xf32>
    %69 = arith.mulf %63, %63 : vector<8x128xf32>
    %70 = arith.addf %60, %69 : vector<8x128xf32>
    %c7_i32 = arith.constant 7 : i32
    %71 = arith.index_cast %c7_i32 : i32 to index
    %c0_13 = arith.constant 0 : index
    %c0_14 = arith.constant 0 : index
    %72 = vector.load %arg2[%71, %c0_13, %c0_14] : memref<16x8x128xf32, #tpu.memory_space<vmem>>, vector<1x8x128xf32>
    %73 = vector.shape_cast %72 : vector<1x8x128xf32> to vector<8x128xf32>
    %74 = arith.index_cast %c7_i32 : i32 to index
    %75 = memref.load %arg1[%74] : memref<16xf32, #tpu.memory_space<smem>>
    %76 = vector.broadcast %75 : f32 to vector<8x128xf32>
    %77 = arith.mulf %73, %76 : vector<8x128xf32>
    %78 = arith.addf %68, %77 : vector<8x128xf32>
    %79 = arith.mulf %73, %73 : vector<8x128xf32>
    %80 = arith.addf %70, %79 : vector<8x128xf32>
    %c8_i32 = arith.constant 8 : i32
    %81 = arith.index_cast %c8_i32 : i32 to index
    %c0_15 = arith.constant 0 : index
    %c0_16 = arith.constant 0 : index
    %82 = vector.load %arg2[%81, %c0_15, %c0_16] : memref<16x8x128xf32, #tpu.memory_space<vmem>>, vector<1x8x128xf32>
    %83 = vector.shape_cast %82 : vector<1x8x128xf32> to vector<8x128xf32>
    %84 = arith.index_cast %c8_i32 : i32 to index
    %85 = memref.load %arg1[%84] : memref<16xf32, #tpu.memory_space<smem>>
    %86 = vector.broadcast %85 : f32 to vector<8x128xf32>
    %87 = arith.mulf %83, %86 : vector<8x128xf32>
    %88 = arith.addf %78, %87 : vector<8x128xf32>
    %89 = arith.mulf %83, %83 : vector<8x128xf32>
    %90 = arith.addf %80, %89 : vector<8x128xf32>
    %c9_i32 = arith.constant 9 : i32
    %91 = arith.index_cast %c9_i32 : i32 to index
    %c0_17 = arith.constant 0 : index
    %c0_18 = arith.constant 0 : index
    %92 = vector.load %arg2[%91, %c0_17, %c0_18] : memref<16x8x128xf32, #tpu.memory_space<vmem>>, vector<1x8x128xf32>
    %93 = vector.shape_cast %92 : vector<1x8x128xf32> to vector<8x128xf32>
    %94 = arith.index_cast %c9_i32 : i32 to index
    %95 = memref.load %arg1[%94] : memref<16xf32, #tpu.memory_space<smem>>
    %96 = vector.broadcast %95 : f32 to vector<8x128xf32>
    %97 = arith.mulf %93, %96 : vector<8x128xf32>
    %98 = arith.addf %88, %97 : vector<8x128xf32>
    %99 = arith.mulf %93, %93 : vector<8x128xf32>
    %100 = arith.addf %90, %99 : vector<8x128xf32>
    %c10_i32 = arith.constant 10 : i32
    %101 = arith.index_cast %c10_i32 : i32 to index
    %c0_19 = arith.constant 0 : index
    %c0_20 = arith.constant 0 : index
    %102 = vector.load %arg2[%101, %c0_19, %c0_20] : memref<16x8x128xf32, #tpu.memory_space<vmem>>, vector<1x8x128xf32>
    %103 = vector.shape_cast %102 : vector<1x8x128xf32> to vector<8x128xf32>
    %104 = arith.index_cast %c10_i32 : i32 to index
    %105 = memref.load %arg1[%104] : memref<16xf32, #tpu.memory_space<smem>>
    %106 = vector.broadcast %105 : f32 to vector<8x128xf32>
    %107 = arith.mulf %103, %106 : vector<8x128xf32>
    %108 = arith.addf %98, %107 : vector<8x128xf32>
    %109 = arith.mulf %103, %103 : vector<8x128xf32>
    %110 = arith.addf %100, %109 : vector<8x128xf32>
    %c11_i32 = arith.constant 11 : i32
    %111 = arith.index_cast %c11_i32 : i32 to index
    %c0_21 = arith.constant 0 : index
    %c0_22 = arith.constant 0 : index
    %112 = vector.load %arg2[%111, %c0_21, %c0_22] : memref<16x8x128xf32, #tpu.memory_space<vmem>>, vector<1x8x128xf32>
    %113 = vector.shape_cast %112 : vector<1x8x128xf32> to vector<8x128xf32>
    %114 = arith.index_cast %c11_i32 : i32 to index
    %115 = memref.load %arg1[%114] : memref<16xf32, #tpu.memory_space<smem>>
    %116 = vector.broadcast %115 : f32 to vector<8x128xf32>
    %117 = arith.mulf %113, %116 : vector<8x128xf32>
    %118 = arith.addf %108, %117 : vector<8x128xf32>
    %119 = arith.mulf %113, %113 : vector<8x128xf32>
    %120 = arith.addf %110, %119 : vector<8x128xf32>
    %c12_i32 = arith.constant 12 : i32
    %121 = arith.index_cast %c12_i32 : i32 to index
    %c0_23 = arith.constant 0 : index
    %c0_24 = arith.constant 0 : index
    %122 = vector.load %arg2[%121, %c0_23, %c0_24] : memref<16x8x128xf32, #tpu.memory_space<vmem>>, vector<1x8x128xf32>
    %123 = vector.shape_cast %122 : vector<1x8x128xf32> to vector<8x128xf32>
    %124 = arith.index_cast %c12_i32 : i32 to index
    %125 = memref.load %arg1[%124] : memref<16xf32, #tpu.memory_space<smem>>
    %126 = vector.broadcast %125 : f32 to vector<8x128xf32>
    %127 = arith.mulf %123, %126 : vector<8x128xf32>
    %128 = arith.addf %118, %127 : vector<8x128xf32>
    %129 = arith.mulf %123, %123 : vector<8x128xf32>
    %130 = arith.addf %120, %129 : vector<8x128xf32>
    %c13_i32 = arith.constant 13 : i32
    %131 = arith.index_cast %c13_i32 : i32 to index
    %c0_25 = arith.constant 0 : index
    %c0_26 = arith.constant 0 : index
    %132 = vector.load %arg2[%131, %c0_25, %c0_26] : memref<16x8x128xf32, #tpu.memory_space<vmem>>, vector<1x8x128xf32>
    %133 = vector.shape_cast %132 : vector<1x8x128xf32> to vector<8x128xf32>
    %134 = arith.index_cast %c13_i32 : i32 to index
    %135 = memref.load %arg1[%134] : memref<16xf32, #tpu.memory_space<smem>>
    %136 = vector.broadcast %135 : f32 to vector<8x128xf32>
    %137 = arith.mulf %133, %136 : vector<8x128xf32>
    %138 = arith.addf %128, %137 : vector<8x128xf32>
    %139 = arith.mulf %133, %133 : vector<8x128xf32>
    %140 = arith.addf %130, %139 : vector<8x128xf32>
    %c14_i32 = arith.constant 14 : i32
    %141 = arith.index_cast %c14_i32 : i32 to index
    %c0_27 = arith.constant 0 : index
    %c0_28 = arith.constant 0 : index
    %142 = vector.load %arg2[%141, %c0_27, %c0_28] : memref<16x8x128xf32, #tpu.memory_space<vmem>>, vector<1x8x128xf32>
    %143 = vector.shape_cast %142 : vector<1x8x128xf32> to vector<8x128xf32>
    %144 = arith.index_cast %c14_i32 : i32 to index
    %145 = memref.load %arg1[%144] : memref<16xf32, #tpu.memory_space<smem>>
    %146 = vector.broadcast %145 : f32 to vector<8x128xf32>
    %147 = arith.mulf %143, %146 : vector<8x128xf32>
    %148 = arith.addf %138, %147 : vector<8x128xf32>
    %149 = arith.mulf %143, %143 : vector<8x128xf32>
    %150 = arith.addf %140, %149 : vector<8x128xf32>
    %c15_i32 = arith.constant 15 : i32
    %151 = arith.index_cast %c15_i32 : i32 to index
    %c0_29 = arith.constant 0 : index
    %c0_30 = arith.constant 0 : index
    %152 = vector.load %arg2[%151, %c0_29, %c0_30] : memref<16x8x128xf32, #tpu.memory_space<vmem>>, vector<1x8x128xf32>
    %153 = vector.shape_cast %152 : vector<1x8x128xf32> to vector<8x128xf32>
    %154 = arith.index_cast %c15_i32 : i32 to index
    %155 = memref.load %arg1[%154] : memref<16xf32, #tpu.memory_space<smem>>
    %156 = vector.broadcast %155 : f32 to vector<8x128xf32>
    %157 = arith.mulf %153, %156 : vector<8x128xf32>
    %158 = arith.addf %148, %157 : vector<8x128xf32>
    %159 = arith.mulf %153, %153 : vector<8x128xf32>
    %160 = arith.addf %150, %159 : vector<8x128xf32>
    %c16_i32 = arith.constant 16 : i32
    %cst_31 = arith.constant 9.99999996E-13 : f32
    %161 = vector.broadcast %cst_31 : f32 to vector<8x128xf32>
    %162 = arith.addf %160, %161 : vector<8x128xf32>
    %163 = math.rsqrt %162 : vector<8x128xf32>
    %164 = arith.mulf %158, %163 : vector<8x128xf32>
    %c0_32 = arith.constant 0 : index
    %c0_33 = arith.constant 0 : index
    %165 = vector.load %arg4[%c0_32, %c0_33] : memref<8x128xf32, #tpu.memory_space<vmem>>, vector<8x128xf32>
    tpu.vector_store %arg4[%c0_32, %c0_33], %164 {strides = array<i32>} : memref<8x128xf32, #tpu.memory_space<vmem>>, vector<8x128xf32>,
    %c0_34 = arith.constant 0 : index
    %c0_35 = arith.constant 0 : index
    %166 = vector.load %arg3[%c0_34, %c0_35] : memref<8x128xf32, #tpu.memory_space<vmem>>, vector<8x128xf32>
    %167 = arith.subf %164, %166 : vector<8x128xf32>
    %168 = arith.mulf %167, %167 : vector<8x128xf32>
    %169 = vector.shape_cast %168 : vector<8x128xf32> to vector<1x8x128xf32>
    %cst_36 = arith.constant dense<0.000000e+00> : vector<8x128xf32>
    %170 = vector.multi_reduction <add>, %169, %cst_36 [0] : vector<1x8x128xf32> to vector<8x128xf32>
    %c0_37 = arith.constant 0 : index
    %c0_38 = arith.constant 0 : index
    %c0_39 = arith.constant 0 : index
    %171 = vector.load %arg5[%c0_37, %c0_38, %c0_39] : memref<1x8x128xf32, #tpu.memory_space<vmem>>, vector<1x8x128xf32>
    %172 = vector.shape_cast %171 : vector<1x8x128xf32> to vector<8x128xf32>
    %173 = vector.shape_cast %170 : vector<8x128xf32> to vector<1x8x128xf32>
    tpu.vector_store %arg5[%c0_37, %c0_38, %c0_39], %173 {strides = array<i32>} : memref<1x8x128xf32, #tpu.memory_space<vmem>>, vector<1x8x128xf32>,
    return
  }
  func.func @transform_0(%arg0: i32) -> i32 {
    %c0_i32 = arith.constant 0 : i32
    %c0_i32_0 = arith.constant 0 : i32
    return %c0_i32 : i32
  }
  func.func @transform_1(%arg0: i32) -> (i32, i32, i32) {
    %c0_i32 = arith.constant 0 : i32
    %c0_i32_0 = arith.constant 0 : i32
    %c0_i32_1 = arith.constant 0 : i32
    return %c0_i32, %arg0, %c0_i32_0 : i32, i32, i32
  }
  func.func @transform_2(%arg0: i32) -> (i32, i32) {
    %c0_i32 = arith.constant 0 : i32
    %c0_i32_0 = arith.constant 0 : i32
    return %arg0, %c0_i32 : i32, i32
  }
  func.func @transform_3(%arg0: i32) -> (i32, i32) {
    %c0_i32 = arith.constant 0 : i32
    %c0_i32_0 = arith.constant 0 : i32
    return %arg0, %c0_i32 : i32, i32
  }
  func.func @transform_4(%arg0: i32) -> (i32, i32, i32) {
    %c0_i32 = arith.constant 0 : i32
    %c0_i32_0 = arith.constant 0 : i32
    %c0_i32_1 = arith.constant 0 : i32
    return %arg0, %c0_i32, %c0_i32_0 : i32, i32, i32
  }
}

</mosaic_0001>

<bundles_post_ra>
// kernel: tpu_custom_call.1
= control target key start
LH: loop header
LB: loop body
LE: loop exit
PB: predicated region body
PF: predicated region fallthrough
CT: control target
= control target key end

     0   :  { %10 = vsyncpa [#allocation5], 0  ;;  %s448_s0 = inlined_call_operand.hbm [shape: f32[16], index: 0, kind: input, shape index: {}]   ;;  %s449_s1 = inlined_call_operand.hbm [shape: f32[16,8,128], index: 1, kind: input, shape index: {}]   ;;  %s450_s2 = inlined_call_operand.hbm [shape: f32[8,128], index: 2, kind: input, shape index: {}]   ;;  %s451_s3 = inlined_call_operand.hbm [shape: f32[8,128], index: 3, kind: output, shape index: {0}]   ;;  %s452_s4 = inlined_call_operand.hbm [shape: f32[1,8,128], index: 4, kind: output, shape index: {1}]  }
   0x1   :  { %11 = vsyncpa [#allocation3], 0 }
   0x2   :  { %12 = vsyncpa [#allocation8], 0 }
   0x3   :  { %13 = vsyncpa [#allocation4], 0 }
   0x4   :  { %14 = vsyncpa [#allocation11], 0  ;;  %s20_s17 = sshll.u32 %s448_s0, 4  ;;  %s28_s20 = sshll.u32 %s449_s1, 4  ;;  %s21_s17 = int_to_ptr.hbm [resolvable:$true] %s20_s17  ;;  %s29_s20 = int_to_ptr.hbm [resolvable:$true] %s28_s20 }
   0x5   :  { %s383_s21 = smov [#allocation2]   ;;  %s384_s22 = smov [#allocation6]  }
   0x6   :  { %23 = dma.hbm_to_smem %s21_s17, 16, %s383_s21, [#allocation5]  }
   0x7   :  { %s30_s23 = sshll.u32 %s384_s22, 4  ;;  %s385_s24 = smov 128   ;;  %s31_s23 = int_to_ptr.vmem [resolvable:$true] %s30_s23 }
   0x8   :  { %s386_s25 = smov 8   ;;  %s42_s28 = sshll.u32 %s450_s2, 4  ;;  %s43_s28 = int_to_ptr.hbm [resolvable:$true] %s42_s28 }
   0x9   :  { %36 = dma.hbm_to_vmem [thread:$0]  %s29_s20, 2048, %s31_s23, [#allocation3], %s385_s24, %s385_s24, %s386_s25  }
   0xa   :  { %s387_s0 = smov [#allocation7]  }
   0xb   :  { %s44_s29 = sshll.u32 %s387_s0, 4  ;;  %s45_s29 = int_to_ptr.vmem [resolvable:$true] %s44_s29 }
   0xc   :  { %47 = dma.hbm_to_vmem [thread:$0]  %s43_s28, 128, %s45_s29, [#allocation8]  }
   0xd   :  { %373 = dma.done.wait [#allocation5], 16  }
   0xe   :  { %374 = vsyncadd [#allocation5], 4294967280 }
   0xf   :  { %375 = dma.done.wait [#allocation3], 2048  }
  0x10   :  { %376 = vsyncadd [#allocation3], 4294965248 }
  0x11   :  { %377 = dma.done.wait [#allocation8], 128  }
  0x12   :  { %378 = vsyncadd [#allocation8], 4294967168 }
  0x13   :  { %60 = sfence }
  0x14   :  { %v61_v0 = vld [vmem:[#allocation6] sm:$0xff]  ;;  %s62_s1 = sld [smem:[#allocation2]]  ;;  %v69_v1 = vld [vmem:[#allocation6 + $0x8] sm:$0xff]  ;;  %v77_v2 = vld [vmem:[#allocation6 + $0x10] sm:$0xff]  ;;  %s388_s18 = smov [#allocation9]  }
  0x15   :  { %v66_v3 = vmul.f32 %v61_v0, %v61_v0  ;;  %s241_s30 = sld [smem:[#allocation2 + $0x1]]  ;;  %v74_v4 = vmul.f32 %v69_v1, %v69_v1  ;;  %v82_v5 = vmul.f32 %v77_v2, %v77_v2  ;;  %v85_v6 = vld [vmem:[#allocation6 + $0x18] sm:$0xff]  ;;  %v93_v7 = vld [vmem:[#allocation6 + $0x20] sm:$0xff]  ;;  %v101_v10 = vld [vmem:[#allocation6 + $0x28] sm:$0xff]  ;;  %s211_s19 = sshll.u32 %s388_s18, 4  ;;  %s212_s19 = int_to_ptr.vmem [resolvable:$true] %s211_s19 }
  0x16   :  { %s242_s2 = sld [smem:[#allocation2 + $0x2]]  ;;  %v90_v9 = vmul.f32 %v85_v6, %v85_v6  ;;  %v98_v12 = vmul.f32 %v93_v7, %v93_v7  ;;  %v109_v14 = vld [vmem:[#allocation6 + $0x30] sm:$0xff]  ;;  %v106_v18 = vmul.f32 %v101_v10, %v101_v10  ;;  %v117_v21 = vld [vmem:[#allocation6 + $0x38] sm:$0xff]  ;;  %v125_v29 = vld [vmem:[#allocation6 + $0x40] sm:$0xff]  ;;  %s213_s22 = sshll.u32 %s451_s3, 4  ;;  %s214_s22 = int_to_ptr.hbm [resolvable:$true] %s213_s22 }
  0x17   :  { %v75_v8 = vadd.f32 %v74_v4, %v66_v3  ;;  %s243_s5 = sld [smem:[#allocation2 + $0x3]]  ;;  %v114_v25 = vmul.f32 %v109_v14, %v109_v14  ;;  %v122_v32 = vmul.f32 %v117_v21, %v117_v21  ;;  %v133_v35 = vld [vmem:[#allocation6 + $0x48] sm:$0xff]  ;;  %v130_v38 = vmul.f32 %v125_v29, %v125_v29  ;;  %v141_v41 = vld [vmem:[#allocation6 + $0x50] sm:$0xff]  ;;  %v149_v47 = vld [vmem:[#allocation6 + $0x58] sm:$0xff]  ;;  %s389_s23 = smov [#allocation10]  }
  0x18   :  { %s244_s6 = sld [smem:[#allocation2 + $0x4]]  ;;  %v138_v44 = vmul.f32 %v133_v35, %v133_v35  ;;  %v146_v50 = vmul.f32 %v141_v41, %v141_v41  ;;  %v157_v53 = vld [vmem:[#allocation6 + $0x60] sm:$0xff]  ;;  %v154_v56 = vmul.f32 %v149_v47, %v149_v47  ;;  %v165_v59 = vld [vmem:[#allocation6 + $0x68] sm:$0xff]  ;;  %s222_s24 = sshll.u32 %s389_s23, 4  ;;  %s223_s24 = int_to_ptr.vmem [resolvable:$true] %s222_s24 }
  0x19   :  { %v83_v11 = vadd.f32 %v82_v5, %v75_v8  ;;  %s424_s7 = sld [smem:[#allocation2 + $0x5]]  ;;  %v162_v61 = vmul.f32 %v157_v53, %v157_v53  ;;  %v170_v3 = vmul.f32 %v165_v59, %v165_v59  ;;  %v181_v5 = vld [vmem:[#allocation6 + $0x78] sm:$0xff]  ;;  %s224_s27 = sshll.u32 %s452_s4, 4  ;;  %s225_s27 = int_to_ptr.hbm [resolvable:$true] %s224_s27 }
  0x1a   :  { %v63_v13 = vstv %s62_s1  ;;  %s426_s8 = sld [smem:[#allocation2 + $0x6]] }
  0x1b   :  { %v64_v15 = vmul.f32 %v63_v13, %v61_v0  ;;  %v71_v16 = vstv %s241_s30  ;;  %v91_v17 = vadd.f32 %v90_v9, %v83_v11  ;;  %s428_s9 = sld [smem:[#allocation2 + $0x7]] }
  0x1c   :  { %v72_v19 = vmul.f32 %v71_v16, %v69_v1  ;;  %v79_v20 = vstv %s242_s2  ;;  %s430_s10 = sld [smem:[#allocation2 + $0x8]]  ;;  %v173_v1 = vld [vmem:[#allocation6 + $0x70] sm:$0xff] }
  0x1d   :  { %v80_v22 = vmul.f32 %v79_v20, %v77_v2  ;;  %v87_v23 = vstv %s243_s5  ;;  %v99_v24 = vadd.f32 %v98_v12, %v91_v17  ;;  %s433_s11 = sld [smem:[#allocation2 + $0x9]]  ;;  %v178_v8 = vmul.f32 %v173_v1, %v173_v1 }
  0x1e   :  { %v73_v26 = vadd.f32 %v72_v19, %v64_v15  ;;  %v88_v27 = vmul.f32 %v87_v23, %v85_v6  ;;  %v95_v28 = vstv %s244_s6  ;;  %s436_s12 = sld [smem:[#allocation2 + $0xa]]  ;;  %v186_v12 = vmul.f32 %v181_v5, %v181_v5 }
  0x1f   :  { %v103_v30 = vstv %s424_s7  ;;  %v107_v31 = vadd.f32 %v106_v18, %v99_v24  ;;  %v96_v34 = vmul.f32 %v95_v28, %v93_v7  ;;  %s251_s13 = sld [smem:[#allocation2 + $0xb]] }
  0x20   :  { %v81_v33 = vadd.f32 %v80_v22, %v73_v26  ;;  %v111_v36 = vstv %s426_s8  ;;  %v104_v40 = vmul.f32 %v103_v30, %v101_v10  ;;  %s252_s14 = sld [smem:[#allocation2 + $0xc]] }
  0x21   :  { %v115_v37 = vadd.f32 %v114_v25, %v107_v31  ;;  %v119_v42 = vstv %s428_s9  ;;  %v112_v46 = vmul.f32 %v111_v36, %v109_v14  ;;  %s253_s15 = sld [smem:[#allocation2 + $0xd]] }
  0x22   :  { %v89_v39 = vadd.f32 %v88_v27, %v81_v33  ;;  %v127_v48 = vstv %s430_s10  ;;  %v120_v52 = vmul.f32 %v119_v42, %v117_v21  ;;  %s254_s16 = sld [smem:[#allocation2 + $0xe]] }
  0x23   :  { %v123_v43 = vadd.f32 %v122_v32, %v115_v37  ;;  %v135_v54 = vstv %s433_s11  ;;  %v128_v58 = vmul.f32 %v127_v48, %v125_v29  ;;  %s255_s17 = sld [smem:[#allocation2 + $0xf]] }
  0x24   :  { %v97_v45 = vadd.f32 %v96_v34, %v89_v39  ;;  %v136_v63 = vmul.f32 %v135_v54, %v133_v35  ;;  %v143_v0 = vstv %s436_s12 }
  0x25   :  { %v131_v49 = vadd.f32 %v130_v38, %v123_v43  ;;  %v144_v6 = vmul.f32 %v143_v0, %v141_v41  ;;  %v151_v10 = vstv %s251_s13  ;;  %v201_v38 = vld [vmem:[#allocation7] sm:$0xff] }
  0x26   :  { %v105_v51 = vadd.f32 %v104_v40, %v97_v45  ;;  %v152_v14 = vmul.f32 %v151_v10, %v149_v47  ;;  %v159_v16 = vstv %s252_s14 }
  0x27   :  { %v139_v55 = vadd.f32 %v138_v44, %v131_v49  ;;  %v160_v19 = vmul.f32 %v159_v16, %v157_v53  ;;  %v167_v21 = vstv %s253_s15 }
  0x28   :  { %v113_v57 = vadd.f32 %v112_v46, %v105_v51  ;;  %v168_v23 = vmul.f32 %v167_v21, %v165_v59  ;;  %v175_v24 = vstv %s254_s16 }
  0x29   :  { %v147_v60 = vadd.f32 %v146_v50, %v139_v55  ;;  %v176_v27 = vmul.f32 %v175_v24, %v173_v1  ;;  %v183_v28 = vstv %s255_s17 }
  0x2a   :  { %v121_v62 = vadd.f32 %v120_v52, %v113_v57  ;;  %v184_v32 = vmul.f32 %v183_v28, %v181_v5 }
  0x2b   :  { %v155_v2 = vadd.f32 %v154_v56, %v147_v60 }
  0x2c   :  { %v129_v4 = vadd.f32 %v128_v58, %v121_v62 }
  0x2d   :  { %v163_v7 = vadd.f32 %v162_v61, %v155_v2 }
  0x2e   :  { %v137_v9 = vadd.f32 %v136_v63, %v129_v4 }
  0x2f   :  { %v171_v11 = vadd.f32 %v170_v3, %v163_v7 }
  0x30   :  { %v145_v13 = vadd.f32 %v144_v6, %v137_v9 }
  0x31   :  { %v179_v15 = vadd.f32 %v178_v8, %v171_v11 }
  0x32   :  { %v153_v18 = vadd.f32 %v152_v14, %v145_v13 }
  0x33   :  { %v187_v17 = vadd.f32 %v186_v12, %v179_v15 }
  0x34   :  { %v161_v22 = vadd.f32 %v160_v19, %v153_v18 }
  0x35   :  { %v188_v20 = vadd.f32 1e-12, %v187_v17 }
  0x36   :  { %v169_v26 = vadd.f32 %v168_v23, %v161_v22 }
  0x37   :  { %263 = vrsqrt.f32 %v188_v20  ;;  %vm195_vm0 = vweird.f32 %v188_v20 }
  0x38   :  { %v177_v31 = vadd.f32 %v176_v27, %v169_v26 }
  0x3a   :  { %v185_v35 = vadd.f32 %v184_v32, %v177_v31 }
  0x3d   :  { %v264_v25 = vpop.eup %263 }
  0x3e   :  { %v190_v29 = vmul.f32 %v264_v25, %v188_v20  ;;  %vm196_vm1 = vweird.f32 %v264_v25 }
  0x3f   :  { %vm197_vm2 = vmor %vm195_vm0, %vm196_vm1 }
  0x40   :  { %v191_v30 = vmul.f32 %v264_v25, %v190_v29 }
  0x42   :  { %v192_v33 = vmul.f32 0.5, %v191_v30 }
  0x44   :  { %v193_v34 = vsub.f32 1.5, %v192_v33 }
  0x46   :  { %v194_v36 = vmul.f32 %v264_v25, %v193_v34 }
  0x48   :  { %v198_v37 = vsel %vm197_vm2, %v264_v25, %v194_v36 }
  0x49   :  { %v199_v39 = vmul.f32 %v198_v37, %v185_v35 }
  0x4b   :  { %200 = vst [vmem:[#allocation9] sm:$0xff] %v199_v39  ;;  %v202_v40 = vsub.f32 %v199_v39, %v201_v38 }
  0x4c   :  { %216 = dma.vmem_to_hbm [thread:$0]  %s212_s19, 128, %s214_s22, [#allocation4]  }
  0x4d   :  { %v203_v41 = vmul.f32 %v202_v40, %v202_v40 }
  0x4f   :  { %205 = vst [vmem:[#allocation10] sm:$0xff] %v203_v41 }
  0x50   :  { %227 = dma.vmem_to_hbm [thread:$0]  %s223_s24, 128, %s225_s27, [#allocation11]  }
  0x51   :  { %379 = dma.done.wait [#allocation4], 128  }
  0x52   :  { %380 = vsyncadd [#allocation4], 4294967168 }
  0x53   :  { %381 = dma.done.wait [#allocation11], 128  }
  0x54   :  { %382 = vsyncadd [#allocation11], 4294967168 }
  0x55   :  { %236 = vsyncpa [#allocation3], 1 }
  0x56   :  { %237 = vsyncpa [#allocation8], 1 }
  0x57   :  { %238 = vsyncpa [#allocation4], 1 }
  0x58   :  { %239 = vsyncpa [#allocation11], 1 }
  0x59   :  { %240 = vsyncpa [#allocation5], 1 }

</bundles_post_ra>
